<compile_context>
chip_gen: v7x
topology: tpu7x:2x2x1
jax: 0.10.0
libtpu: 0.0.40
codegen_flags: <defaults>
</compile_context>

<pallas_src>
import functools
import math

import jax
import jax.numpy as jnp
from jax.experimental import pallas as pl
from jax.experimental.pallas import tpu as pltpu


def _pick_tile(dim: int, candidates) -> int:
    """Largest candidate that evenly divides dim, else the full dim."""
    for c in candidates:
        if c <= dim and dim % c == 0:
            return c
    return dim


# ---------------------------------------------------------------------------
# Tiled matmul kernel (used for all four Linear projections).
# ---------------------------------------------------------------------------
def _matmul_kernel(a_ref, b_ref, o_ref, acc_ref):
    @pl.when(pl.program_id(2) == 0)
    def _():
        acc_ref[...] = jnp.zeros_like(acc_ref)

    acc_ref[...] += jnp.dot(
        a_ref[...], b_ref[...], preferred_element_type=jnp.float32
    )

    @pl.when(pl.program_id(2) == pl.num_programs(2) - 1)
    def _():
        o_ref[...] = acc_ref[...].astype(o_ref.dtype)


def pallas_matmul(a: jnp.ndarray, b: jnp.ndarray) -> jnp.ndarray:
    """a: (M, K) @ b: (K, N) -> (M, N) with f32 accumulation on the MXU."""
    M, K = a.shape
    K2, N = b.shape
    assert K == K2
    tm = _pick_tile(M, (512, 256, 128, 64, 32, 16, 8))
    tn = _pick_tile(N, (512, 256, 128))          # lane dim: multiple of 128 or full N
    tk = _pick_tile(K, (1024, 512, 256, 128))
    grid = (M // tm, N // tn, K // tk)

    itemsize = a.dtype.itemsize
    cost = pl.CostEstimate(
        flops=2 * M * N * K,
        transcendentals=0,
        bytes_accessed=(M * K + K * N + M * N) * itemsize,
    )
    return pl.pallas_call(
        _matmul_kernel,
        out_shape=jax.ShapeDtypeStruct((M, N), a.dtype),
        grid_spec=pltpu.PrefetchScalarGridSpec(
            num_scalar_prefetch=0,
            grid=grid,
            in_specs=[
                pl.BlockSpec((tm, tk), lambda i, j, k: (i, k)),
                pl.BlockSpec((tk, tn), lambda i, j, k: (k, j)),
            ],
            out_specs=pl.BlockSpec((tm, tn), lambda i, j, k: (i, j)),
            scratch_shapes=[pltpu.VMEM((tm, tn), jnp.float32)],
        ),
        compiler_params=pltpu.CompilerParams(
            dimension_semantics=("parallel", "parallel", "arbitrary"),
            vmem_limit_bytes=32 * 1024 * 1024,
        ),
        cost_estimate=cost,
    )(a, b)


# ---------------------------------------------------------------------------
# Fused scaled dot-product attention kernel (softmax over axis 0, as in the spec).
# ---------------------------------------------------------------------------
def _attention_kernel(q_ref, k_ref, v_ref, o_ref, *, sm_scale):
    q = q_ref[...].astype(jnp.float32)
    k = k_ref[...].astype(jnp.float32)
    v = v_ref[...].astype(jnp.float32)
    s = jnp.einsum("bqd,bkd->bqk", q, k, preferred_element_type=jnp.float32) * sm_scale
    # NOTE: torch spec normalizes over dim 0 (batch*heads), not over keys.
    m = jnp.max(s, axis=0, keepdims=True)
    p = jnp.exp(s - m)
    w = p / jnp.sum(p, axis=0, keepdims=True)
    o = jnp.einsum("bqk,bkd->bqd", w, v, preferred_element_type=jnp.float32)
    o_ref[...] = o.astype(o_ref.dtype)


def _attention_dropout_kernel(q_ref, k_ref, v_ref, keep_ref, o_ref, *, sm_scale, inv_keep):
    q = q_ref[...].astype(jnp.float32)
    k = k_ref[...].astype(jnp.float32)
    v = v_ref[...].astype(jnp.float32)
    s = jnp.einsum("bqd,bkd->bqk", q, k, preferred_element_type=jnp.float32) * sm_scale
    m = jnp.max(s, axis=0, keepdims=True)
    p = jnp.exp(s - m)
    w = p / jnp.sum(p, axis=0, keepdims=True)
    w = w * (keep_ref[...].astype(jnp.float32) * inv_keep)  # inverted dropout
    o = jnp.einsum("bqk,bkd->bqd", w, v, preferred_element_type=jnp.float32)
    o_ref[...] = o.astype(o_ref.dtype)


def pallas_dot_product_attention(q, k, v, *, dropout_rate=0.0, dropout_key=None):
    """q: (BH, Tq, d), k/v: (BH, Tk, d) -> (BH, Tq, d)."""
    BH, Tq, d = q.shape
    _, Tk, _ = k.shape
    sm_scale = 1.0 / math.sqrt(d)
    tq = _pick_tile(Tq, (1024, 512, 256, 128, 64, 32, 16, 8))
    grid = (Tq // tq,)

    q_spec = pl.BlockSpec((BH, tq, d), lambda i: (0, i, 0))
    kv_spec = pl.BlockSpec((BH, Tk, d), lambda i: (0, 0, 0))   # resident across grid
    o_spec = pl.BlockSpec((BH, tq, d), lambda i: (0, i, 0))
    out_shape = jax.ShapeDtypeStruct((BH, Tq, d), q.dtype)

    itemsize = q.dtype.itemsize
    flops = 4 * BH * Tq * Tk * d
    io_bytes = (2 * BH * Tq * d + 2 * BH * Tk * d) * itemsize
    params = pltpu.CompilerParams(
        dimension_semantics=("parallel",),
        vmem_limit_bytes=32 * 1024 * 1024,
    )

    if dropout_rate == 0.0:
        kernel = functools.partial(_attention_kernel, sm_scale=sm_scale)
        cost = pl.CostEstimate(
            flops=flops, transcendentals=BH * Tq * Tk, bytes_accessed=io_bytes
        )
        return pl.pallas_call(
            kernel,
            out_shape=out_shape,
            grid_spec=pltpu.PrefetchScalarGridSpec(
                num_scalar_prefetch=0,
                grid=grid,
                in_specs=[q_spec, kv_spec, kv_spec],
                out_specs=o_spec,
            ),
            compiler_params=params,
            cost_estimate=cost,
        )(q, k, v)

    assert dropout_key is not None
    keep = jax.random.bernoulli(
        dropout_key, 1.0 - dropout_rate, (BH, Tq, Tk)
    ).astype(q.dtype)
    keep_spec = pl.BlockSpec((BH, tq, Tk), lambda i: (0, i, 0))
    kernel = functools.partial(
        _attention_dropout_kernel,
        sm_scale=sm_scale,
        inv_keep=1.0 / (1.0 - dropout_rate),
    )
    cost = pl.CostEstimate(
        flops=flops,
        transcendentals=BH * Tq * Tk,
        bytes_accessed=io_bytes + BH * Tq * Tk * itemsize,
    )
    return pl.pallas_call(
        kernel,
        out_shape=out_shape,
        grid_spec=pltpu.PrefetchScalarGridSpec(
            num_scalar_prefetch=0,
            grid=grid,
            in_specs=[q_spec, kv_spec, kv_spec, keep_spec],
            out_specs=o_spec,
        ),
        compiler_params=params,
        cost_estimate=cost,
    )(q, k, v, keep)


# ---------------------------------------------------------------------------
# Module wrapper (matches the torch MultiHeadAttention forward pass).
# ---------------------------------------------------------------------------
class MultiHeadAttentionPallas:
    def __init__(self, key_size, query_size, value_size, num_hiddens, num_heads,
                 dropout, bias=False, *, param_key=None, dtype=jnp.float32):
        assert not bias, "reference module is used with bias=False"
        assert num_hiddens % num_heads == 0
        self.num_heads = num_heads
        self.num_hiddens = num_hiddens
        self.dropout = float(dropout)
        if param_key is None:
            param_key = jax.random.PRNGKey(0)
        kq, kk, kv, ko = jax.random.split(param_key, 4)

        def _init(k, fan_in, fan_out):
            bound = 1.0 / math.sqrt(fan_in)
            return jax.random.uniform(k, (fan_in, fan_out), dtype, -bound, bound)

        # stored as (in, out) so the forward is x @ W  (== torch's x @ weight.T)
        self.W_q = _init(kq, query_size, num_hiddens)
        self.W_k = _init(kk, key_size, num_hiddens)
        self.W_v = _init(kv, value_size, num_hiddens)
        self.W_o = _init(ko, num_hiddens, num_hiddens)

    def __call__(self, queries, keys, values, *, training=False, dropout_key=None):
        B, Tq, _ = queries.shape
        _, Tk, _ = keys.shape
        H, nh = self.num_hiddens, self.num_heads
        d = H // nh

        q = pallas_matmul(queries.reshape(B * Tq, -1), self.W_q).reshape(B, Tq, H)
        k = pallas_matmul(keys.reshape(B * Tk, -1), self.W_k).reshape(B, Tk, H)
        v = pallas_matmul(values.reshape(B * Tk, -1), self.W_v).reshape(B, Tk, H)

        def _transpose_qkv(x, T):  # (B, T, H) -> (B*nh, T, d)
            return x.reshape(B, T, nh, d).transpose(0, 2, 1, 3).reshape(B * nh, T, d)

        qh = _transpose_qkv(q, Tq)
        kh = _transpose_qkv(k, Tk)
        vh = _transpose_qkv(v, Tk)

        rate = self.dropout if training else 0.0
        if rate > 0.0 and dropout_key is None:
            dropout_key = jax.random.PRNGKey(0)
        oh = pallas_dot_product_attention(
            qh, kh, vh, dropout_rate=rate, dropout_key=dropout_key
        )

        # transpose_output: (B*nh, Tq, d) -> (B, Tq, H)
        out = oh.reshape(B, nh, Tq, d).transpose(0, 2, 1, 3).reshape(B * Tq, H)
        return pallas_matmul(out, self.W_o).reshape(B, Tq, H)


# ---------------------------------------------------------------------------
# Pure-JAX reference (mirrors the torch code, including softmax over dim 0).
# ---------------------------------------------------------------------------
def _reference_mha(queries, keys, values, W_q, W_k, W_v, W_o, num_heads):
    hp = jax.lax.Precision.HIGHEST
    B, Tq, _ = queries.shape
    H = W_q.shape[1]
    d = H // num_heads

    def proj(x, W):
        return jnp.einsum("btf,fh->bth", x, W, precision=hp)

    def t_qkv(x):
        T = x.shape[1]
        return x.reshape(B, T, num_heads, d).transpose(0, 2, 1, 3).reshape(B * num_heads, T, d)

    qh = t_qkv(proj(queries, W_q))
    kh = t_qkv(proj(keys, W_k))
    vh = t_qkv(proj(values, W_v))
    scores = jnp.einsum("bqd,bkd->bqk", qh, kh, precision=hp) / math.sqrt(d)
    w = jax.nn.softmax(scores, axis=0)          # torch: F.softmax(scores, dim=0)
    oh = jnp.einsum("bqk,bkd->bqd", w, vh, precision=hp)
    out = oh.reshape(B, num_heads, Tq, d).transpose(0, 2, 1, 3).reshape(B, Tq, H)
    return jnp.einsum("bth,ho->bto", out, W_o, precision=hp)


if __name__ == "__main__":
    B, T, H, NH = 2, 8, 32, 4
    root = jax.random.PRNGKey(0)
    kq, kk, kv, kp = jax.random.split(root, 4)
    queries = jax.random.normal(kq, (B, T, H), dtype=jnp.float32)
    keys = jax.random.normal(kk, (B, T, H), dtype=jnp.float32)
    values = jax.random.normal(kv, (B, T, H), dtype=jnp.float32)

    mha = MultiHeadAttentionPallas(
        key_size=H, query_size=H, value_size=H,
        num_hiddens=H, num_heads=NH, dropout=0.5, bias=False, param_key=kp,
    )

    # eval-mode forward (dropout identity) checked against the pure-JAX reference
    out = jax.block_until_ready(mha(queries, keys, values, training=False))
    ref = _reference_mha(queries, keys, values, mha.W_q, mha.W_k, mha.W_v, mha.W_o, NH)
    assert out.shape == (B, T, H)
    assert jnp.allclose(out, ref, atol=1e-4, rtol=1e-4), float(jnp.max(jnp.abs(out - ref)))

    # training-mode forward: exercises the dropout kernel (mask precomputed in JAX)
    out_tr = jax.block_until_ready(
        mha(queries, keys, values, training=True, dropout_key=jax.random.PRNGKey(42))
    )
    assert out_tr.shape == (B, T, H)

    print("KERNEL_OK")
</pallas_src>

<mosaic_0001>
module attributes {stable_mosaic.version = 11 : i64} {
  func.func @_matmul_kernel(%arg0: i32, %arg1: i32, %arg2: i32, %arg3: memref<16x32xf32, #tpu.memory_space<vmem>>, %arg4: memref<32x32xf32, #tpu.memory_space<vmem>>, %arg5: memref<16x32xf32, #tpu.memory_space<vmem>>, %arg6: memref<16x32xf32, #tpu.memory_space<vmem>>) attributes {dimension_semantics = [#tpu.dimension_semantics<parallel>, #tpu.dimension_semantics<parallel>, #tpu.dimension_semantics<arbitrary>], iteration_bounds = array<i64: 1, 1, 1>, scalar_prefetch = 0 : i64, scratch_operands = 1 : i64, tpu.core_type = #tpu.core_type<tc>, window_params = [{transform_indices = @transform_0, window_bounds = array<i64: 16, 32>}, {transform_indices = @transform_1, window_bounds = array<i64: 32, 32>}, {transform_indices = @transform_2, window_bounds = array<i64: 16, 32>}]} {
    %c0_i32 = arith.constant 0 : i32
    %0 = arith.cmpi eq, %arg2, %c0_i32 : i32
    %1 = arith.extui %0 : i1 to i32
    %c0_i32_0 = arith.constant 0 : i32
    %2 = arith.cmpi ne, %1, %c0_i32_0 : i32
    scf.if %2 {
      %cst_10 = arith.constant 0.000000e+00 : f32
      %12 = vector.broadcast %cst_10 : f32 to vector<16x32xf32>
      %c0_11 = arith.constant 0 : index
      %c0_12 = arith.constant 0 : index
      %13 = vector.load %arg6[%c0_11, %c0_12] : memref<16x32xf32, #tpu.memory_space<vmem>>, vector<16x32xf32>
      tpu.vector_store %arg6[%c0_11, %c0_12], %12 {strides = array<i32>} : memref<16x32xf32, #tpu.memory_space<vmem>>, vector<16x32xf32>,
    } else {
    }
    %c0 = arith.constant 0 : index
    %c0_1 = arith.constant 0 : index
    %3 = vector.load %arg6[%c0, %c0_1] : memref<16x32xf32, #tpu.memory_space<vmem>>, vector<16x32xf32>
    %c0_2 = arith.constant 0 : index
    %c0_3 = arith.constant 0 : index
    %4 = vector.load %arg3[%c0_2, %c0_3] : memref<16x32xf32, #tpu.memory_space<vmem>>, vector<16x32xf32>
    %c0_4 = arith.constant 0 : index
    %c0_5 = arith.constant 0 : index
    %5 = vector.load %arg4[%c0_4, %c0_5] : memref<32x32xf32, #tpu.memory_space<vmem>>, vector<32x32xf32>
    %cst = arith.constant dense<0.000000e+00> : vector<16x32xf32>
    %6 = tpu.matmul %4, %5, %cst {dimension_numbers = #tpu.dot_dimension_numbers<[1], [0], [0], [1], [0, 0, 1, 1], [], []>} : vector<16x32xf32>, vector<32x32xf32>, vector<16x32xf32> -> vector<16x32xf32>
    %7 = arith.addf %3, %6 : vector<16x32xf32>
    %c0_6 = arith.constant 0 : index
    %c0_7 = arith.constant 0 : index
    %8 = vector.load %arg6[%c0_6, %c0_7] : memref<16x32xf32, #tpu.memory_space<vmem>>, vector<16x32xf32>
    tpu.vector_store %arg6[%c0_6, %c0_7], %7 {strides = array<i32>} : memref<16x32xf32, #tpu.memory_space<vmem>>, vector<16x32xf32>,
    %c0_i32_8 = arith.constant 0 : i32
    %9 = arith.cmpi eq, %arg2, %c0_i32_8 : i32
    %10 = arith.extui %9 : i1 to i32
    %c0_i32_9 = arith.constant 0 : i32
    %11 = arith.cmpi ne, %10, %c0_i32_9 : i32
    scf.if %11 {
      %c0_10 = arith.constant 0 : index
      %c0_11 = arith.constant 0 : index
      %12 = vector.load %arg6[%c0_10, %c0_11] : memref<16x32xf32, #tpu.memory_space<vmem>>, vector<16x32xf32>
      %c0_12 = arith.constant 0 : index
      %c0_13 = arith.constant 0 : index
      %13 = vector.load %arg5[%c0_12, %c0_13] : memref<16x32xf32, #tpu.memory_space<vmem>>, vector<16x32xf32>
      tpu.vector_store %arg5[%c0_12, %c0_13], %12 {strides = array<i32>} : memref<16x32xf32, #tpu.memory_space<vmem>>, vector<16x32xf32>,
    } else {
    }
    return
  }
  func.func @transform_0(%arg0: i32, %arg1: i32, %arg2: i32) -> (i32, i32) {
    %c0_i32 = arith.constant 0 : i32
    return %arg0, %arg2 : i32, i32
  }
  func.func @transform_1(%arg0: i32, %arg1: i32, %arg2: i32) -> (i32, i32) {
    %c0_i32 = arith.constant 0 : i32
    return %arg2, %arg1 : i32, i32
  }
  func.func @transform_2(%arg0: i32, %arg1: i32, %arg2: i32) -> (i32, i32) {
    %c0_i32 = arith.constant 0 : i32
    return %arg0, %arg1 : i32, i32
  }
}

</mosaic_0001>

<bundles_post_ra>
// kernel: tpu_custom_call.1
= control target key start
LH: loop header
LB: loop body
LE: loop exit
PB: predicated region body
PF: predicated region fallthrough
CT: control target
= control target key end

     0   :  { %7 = vsyncpa [#allocation4], 0  ;;  %s345_s0 = inlined_call_operand.hbm [shape: f32[16,32], index: 0, kind: input, shape index: {}]   ;;  %s346_s1 = inlined_call_operand.hbm [shape: f32[32,32], index: 1, kind: input, shape index: {}]   ;;  %s347_s2 = inlined_call_operand.hbm [shape: f32[16,32], index: 2, kind: output, shape index: {}]  }
   0x1   :  { %8 = vsyncpa [#allocation7], 0 }
   0x2   :  { %9 = vsyncpa [#allocation5], 0  ;;  %s271_s9 = smov [#allocation3]   ;;  %s199_s13 = scalar_lea.hbm %s345_s0, 256 }
   0x3   :  { %s15_s10 = sshll.u32 %s271_s9, 4  ;;  %p200_p0 = scmp.ne.s32.totalorder %s345_s0, %s199_s13  ;;  %s16_s10 = int_to_ptr.vmem [resolvable:$true] %s15_s10 }
   0x4   :  { %p203_p1 = scmp.lt.u32.totalorder %s199_s13, %s345_s0 }
   0x6   :  { %p205_p2 = pnand %p203_p1, %p200_p0 }
   0x8   :  { %208 = shalt.err (!%p205_p2)
}
   0x9   :  { %s209_s18 = scalar_lea.vmem %s16_s10, 256  ;;  %p214_p4 = scmp.lt.s32.totalorder %s16_s10, %s16_s10 }
   0xa   :  { %p210_p3 = scmp.ne.s32.totalorder %s16_s10, %s209_s18  ;;  %p215_p5 = scmp.lt.s32.totalorder %s209_s18, %s209_s18 }
   0xc   :  { %p216_p6 = por %p215_p5, %p214_p4 }
   0xe   :  { %p217_p7 = pnand %p216_p6, %p210_p3 }
  0x10   :  { %220 = shalt.err (!%p217_p7)
}
  0x11   :  { %s272_s19 = smov 128   ;;  %s273_s20 = smov 8  }
  0x12   :  { %21 = dma.hbm_to_vmem [thread:$0]  %s345_s0, 256, %s16_s10, [#allocation4], %s272_s19, %s272_s19, %s273_s20  }
  0x13   :  { %s274_s23 = smov [#allocation6]   ;;  %s221_s27 = scalar_lea.hbm %s346_s1, 512 }
  0x14   :  { %s27_s24 = sshll.u32 %s274_s23, 4  ;;  %p222_p8 = scmp.ne.s32.totalorder %s346_s1, %s221_s27  ;;  %s28_s24 = int_to_ptr.vmem [resolvable:$true] %s27_s24 }
  0x15   :  { %p225_p9 = scmp.lt.u32.totalorder %s221_s27, %s346_s1 }
  0x17   :  { %p227_p10 = pnand %p225_p9, %p222_p8 }
  0x19   :  { %230 = shalt.err (!%p227_p10)
}
  0x1a   :  { %s231_s4 = scalar_lea.vmem %s28_s24, 512  ;;  %p236_p12 = scmp.lt.s32.totalorder %s28_s24, %s28_s24 }
  0x1b   :  { %p232_p11 = scmp.ne.s32.totalorder %s28_s24, %s231_s4  ;;  %p237_p13 = scmp.lt.s32.totalorder %s231_s4, %s231_s4 }
  0x1d   :  { %p238_p0 = por %p237_p13, %p236_p12 }
  0x1f   :  { %p239_p1 = pnand %p238_p0, %p232_p11 }
  0x21   :  { %242 = shalt.err (!%p239_p1)
}
  0x22   :  { %33 = dma.hbm_to_vmem [thread:$0]  %s346_s1, 512, %s28_s24, [#allocation7], %s272_s19, %s272_s19, %s273_s20  }
  0x23   :  { %265 = dma.done.wait [#allocation4], 256  }
  0x24   :  { %266 = vsyncadd [#allocation4], 4294967040 }
  0x25   :  { %267 = dma.done.wait [#allocation7], 512  }
  0x26   :  { %268 = vsyncadd [#allocation7], 4294966784  ;;  %vm44_vm0 = vcmask 261120   ;;  %v275_v0 = vmov 0.0   ;;  %v51_v1 = vld [vmem:[#allocation6] sm:$0xff]  ;;  %v52_v2 = vld [vmem:[#allocation6 + $0x8] sm:$0xff] }
  0x27   :  { %46 = vst.msk [vmem:[#allocation2 + $0x8] sm:$0xff] %vm44_vm0, %v275_v0  ;;  %45 = vst.msk [vmem:[#allocation2] sm:$0xff] %vm44_vm0, %v275_v0  ;;  %v53_v3 = vld [vmem:[#allocation6 + $0x10] sm:$0xff]  ;;  %v185_v4 = vpack.c.bf16 %v52_v2, %v51_v1  ;;  %v54_v5 = vld [vmem:[#allocation6 + $0x18] sm:$0xff]  ;;  %s276_s1 = smov [#allocation8]  }
  0x28   :  { %v49_v6 = vld [vmem:[#allocation3] sm:$0xff]  ;;  %v189_v7 = vpack.c.bf16 %v54_v5, %v53_v3  ;;  %v50_v8 = vld [vmem:[#allocation3 + $0x8] sm:$0xff]  ;;  %s153_s6 = sshll.u32 %s276_s1, 4  ;;  %s154_s6 = int_to_ptr.vmem [resolvable:$true] %s153_s6 }
  0x29   :  { %182 = vmatprep.mubr.msk.f32.mxu0 %vm44_vm0, %v49_v6  ;;  %186 = vmatprep.subr.bf16.mxu0 %v185_v4  ;;  %s243_s7 = scalar_lea.vmem %s154_s6, 256  ;;  %p248_p3 = scmp.lt.s32.totalorder %s154_s6, %s154_s6 }
  0x2a   :  { %188 = vmatpush3.bf16.msra.mxu0 %v185_v4  ;;  %p244_p2 = scmp.ne.s32.totalorder %s154_s6, %s243_s7  ;;  %p249_p4 = scmp.lt.s32.totalorder %s243_s7, %s243_s7 }
  0x2b   :  { %190 = vmatprep.subr.bf16.mxu0 %v189_v7 }
  0x2c   :  { %p250_p5 = por %p249_p4, %p248_p3 }
  0x2e   :  { %192 = vmatpush3.bf16.msra.mxu0 %v189_v7  ;;  %v48_v9 = vld [vmem:[#allocation2 + $0x8] sm:$0xff]  ;;  %v47_v10 = vld [vmem:[#allocation2] sm:$0xff]  ;;  %p251_p6 = pnand %p250_p5, %p244_p2 }
  0x31   :  { %183 = vmatmul.mubr.msk.f32.vlgmr.msra.gmra.mrb[0].mxu0 %vm44_vm0, %v50_v8 }
 0x104   :  { %v184_v11 = vpop.f32.mrb[0].mxu0 }
 0x105   :  { %v138_v12 = vadd.f32 %v184_v11, %v48_v9  ;;  %v128_v13 = vpop.f32.mrb[1].mxu0 }
 0x106   :  { %v137_v14 = vadd.f32 %v128_v13, %v47_v10 }
 0x107   :  { %140 = vst.msk [vmem:[#allocation2 + $0x8] sm:$0xff] %vm44_vm0, %v138_v12 }
 0x108   :  { %139 = vst.msk [vmem:[#allocation2] sm:$0xff] %vm44_vm0, %v137_v14 }
 0x10e   :  { %v145_v15 = vld [vmem:[#allocation2 + $0x8] sm:$0xff] }
 0x10f   :  { %v144_v16 = vld [vmem:[#allocation2] sm:$0xff]  ;;  %147 = vst.msk [vmem:[#allocation8 + $0x8] sm:$0xff] %vm44_vm0, %v145_v15 }
 0x110   :  { %146 = vst.msk [vmem:[#allocation8] sm:$0xff] %vm44_vm0, %v144_v16 }
 0x111   :  { %254 = shalt.err (!%p251_p6)
}
 0x112   :  { %s255_s10 = scalar_lea.hbm %s347_s2, 256 }
 0x113   :  { %p256_p7 = scmp.ne.s32.totalorder %s347_s2, %s255_s10  ;;  %p259_p8 = scmp.lt.u32.totalorder %s255_s10, %s347_s2 }
 0x115   :  { %p261_p9 = pnand %p259_p8, %p256_p7 }
 0x117   :  { %264 = shalt.err (!%p261_p9)
}
 0x118   :  { %159 = dma.vmem_to_hbm [thread:$0]  %s154_s6, 256, %s347_s2, [#allocation5], %s272_s19, %s272_s19, %s273_s20  }
 0x119   :  { %269 = dma.done.wait [#allocation5], 256  }
 0x11a   :  { %270 = vsyncadd [#allocation5], 4294967040 }
 0x11b   :  { %163 = vsyncpa [#allocation4], 1 }
 0x11c   :  { %164 = vsyncpa [#allocation7], 1 }
 0x11d   :  { %165 = vsyncpa [#allocation5], 1 }

</bundles_post_ra>
